<compile_context>
chip_gen: v7x
topology: tpu7x:2x2x1
jax: 0.10.0
libtpu: 0.0.40
codegen_flags: <defaults>
</compile_context>

<pallas_src>
import math

import jax
import jax.numpy as jnp
from jax.experimental import pallas as pl
from jax.experimental.pallas import tpu as pltpu


def gql_kernel(x_ref, at_ref, wblk_ref, qb_ref, eb_ref, sel_ref, o_ref):
    """One grid step: a block of Bt batches flattened to (Bt*C, HWp) rows.

    x_ref/o_ref: (Bt*C, HWp)  native dtype; row r = (batch r//C, channel r%C)
    at_ref:      (HWp, N)     A^T: query gathered over pool blocks / (kh*kw)
    wblk_ref:    (Bt, Bt*C)   block-diagonal 1x1-conv weights (f32)
    qb_ref:      (1, N)       conv bias folded with query row-sums (f32)
    eb_ref:      (Bt*C, Bt)   one-hot row -> batch (f32)
    sel_ref:     (Bt*C, N)    one-hot row -> (channel % N) (f32)
    """
    x = x_ref[...]

    # The only big contraction: (Bt*C, HWp) @ (HWp, N) in standard MXU
    # orientation (lane-dense, pre-transposed RHS -> no XLU relayout).
    t = jnp.dot(x, at_ref[...], preferred_element_type=jnp.float32)        # (Bt*C, N)

    # Per-batch reduction over channels with the 1x1-conv weights.
    logits = jnp.dot(wblk_ref[...], t, preferred_element_type=jnp.float32)  # (Bt, N)
    att = jax.nn.sigmoid(logits + qb_ref[...])                              # (Bt, N)

    # Expand back to rows: row r gets att[r // C, (r % C) % N].
    rows = jnp.dot(eb_ref[...], att, preferred_element_type=jnp.float32)    # (Bt*C, N)
    gate = jnp.sum(rows * sel_ref[...], axis=1, keepdims=True)              # (Bt*C, 1)

    # Keep the gate in f32; the broadcast multiply upcasts x and casts back.
    o_ref[...] = (x * gate).astype(o_ref.dtype)


def gql_pallas(inputs, query, conv_w, conv_b, *, size=4):
    B, C, H, W = inputs.shape
    N, D = query.shape
    assert D == size * size, "query dim must equal size*size"
    assert C % N == 0, "C must be divisible by number of queries"
    assert H % size == 0 and W % size == 0, "adaptive pool needs divisible H, W"
    kh, kw = H // size, W // size
    HW = H * W
    dtype = inputs.dtype
    itemsize = jnp.dtype(dtype).itemsize

    # Lane-dense spatial axis: pad HW up to a multiple of 128.
    HW_pad = ((HW + 127) // 128) * 128

    # ---------------- block-size (Bt batches per grid step) -----------------
    try:
        vmem_cap = int(pltpu.get_tpu_info().vmem_capacity_bytes)
    except Exception:
        vmem_cap = 64 * 1024 * 1024  # conservative (v7x-sized) fallback

    # Pipeline holds ~2x input + 2x output buffers of the block plus the
    # (double-buffered) constants, so target block ~ vmem_cap / 8
    # (~16 MiB on v5e/v6e's 128 MiB VMEM, ~8 MiB on v7x's 64 MiB).
    block_budget = max(2 << 20, min(16 << 20, vmem_cap // 8))

    per_batch_bytes = C * HW_pad * itemsize
    m = 8 // math.gcd(C, 8)               # Bt granularity: keep Bt*C sublane-aligned
    bt = max(1, block_budget // per_batch_bytes)
    if B >= 2 * m:
        bt = min(bt, (B + 1) // 2)        # keep >= 2 grid steps (v7x has 2 TCs)
    bt = min(bt, 64)                      # bound the (Bt, Bt*C) aux matrices
    Bt = max(m, (bt // m) * m)
    Bt = min(Bt, ((B + m - 1) // m) * m)  # never exceed the padded batch
    grid_len = -(-B // Bt)
    B_pad = grid_len * Bt
    R = Bt * C

    # ---------------- fused constants (computed once, wrapper-side) ---------
    hw_idx = jnp.arange(HW)
    blk = (hw_idx // W // kh) * size + (hw_idx % W) // kw                 # (HW,)
    a_t = query.astype(jnp.float32).T[blk] * (1.0 / (kh * kw))            # (HW, N)
    if HW_pad != HW:
        a_t = jnp.pad(a_t, ((0, HW_pad - HW), (0, 0)))                    # zero pad rows
    a_t = a_t.astype(dtype)   # keep the big contraction on the native MXU path

    qb = (conv_b.reshape(()).astype(jnp.float32)
          * jnp.sum(query.astype(jnp.float32), axis=1)).reshape(1, N)     # (1, N)

    rows_idx = jnp.arange(R)
    batch_of_row = rows_idx // C
    chan_of_row = rows_idx % C
    eb = (batch_of_row[:, None] == jnp.arange(Bt)[None, :]).astype(jnp.float32)   # (R, Bt)
    sel = ((chan_of_row % N)[:, None] == jnp.arange(N)[None, :]).astype(jnp.float32)  # (R, N)
    w_rows = conv_w.reshape(C).astype(jnp.float32)[chan_of_row]           # (R,)
    wblk = eb.T * w_rows[None, :]                                         # (Bt, R) block-diag

    # ---------------- activations: pad + flatten rows (free reshapes) -------
    x3 = inputs.reshape(B, C, HW)
    if HW_pad != HW:
        x3 = jnp.pad(x3, ((0, 0), (0, 0), (0, HW_pad - HW)))
    if B_pad != B:
        x3 = jnp.pad(x3, ((0, B_pad - B), (0, 0), (0, 0)))
    x2 = x3.reshape(B_pad * C, HW_pad)

    # ---------------- VMEM limit co-tuned with the block size ---------------
    block_bytes = R * HW_pad * itemsize
    const_bytes = int(a_t.size) * a_t.dtype.itemsize + 4 * (
        int(wblk.size) + int(qb.size) + int(eb.size) + int(sel.size))
    vmem_limit = 4 * block_bytes + 2 * const_bytes + (4 << 20)
    vmem_limit = int(min(max(vmem_limit, 32 << 20), vmem_cap * 3 // 4))

    out2 = pl.pallas_call(
        gql_kernel,
        out_shape=jax.ShapeDtypeStruct((B_pad * C, HW_pad), dtype),
        grid_spec=pltpu.PrefetchScalarGridSpec(
            num_scalar_prefetch=0,
            grid=(grid_len,),
            in_specs=[
                pl.BlockSpec((R, HW_pad), lambda i: (i, 0)),
                pl.BlockSpec((HW_pad, N), lambda i: (0, 0)),
                pl.BlockSpec((Bt, R), lambda i: (0, 0)),
                pl.BlockSpec((1, N), lambda i: (0, 0)),
                pl.BlockSpec((R, Bt), lambda i: (0, 0)),
                pl.BlockSpec((R, N), lambda i: (0, 0)),
            ],
            out_specs=pl.BlockSpec((R, HW_pad), lambda i: (i, 0)),
        ),
        compiler_params=pltpu.CompilerParams(
            dimension_semantics=("parallel",),
            vmem_limit_bytes=vmem_limit,
        ),
    )(x2, a_t, wblk, qb, eb, sel)

    out = out2.reshape(B_pad, C, HW_pad)[:B, :, :HW].reshape(B, C, H, W)
    return out


def gql_reference(inputs, query, conv_w, conv_b, *, size=4):
    """Pure-JAX reference matching the PyTorch forward."""
    B, C, H, W = inputs.shape
    N, _ = query.shape
    kh, kw = H // size, W // size
    pooled = inputs.reshape(B, C, size, kh, size, kw).mean(axis=(3, 5))   # (B,C,s,s)
    outs = jnp.einsum("bcij,c->bij", pooled, conv_w.reshape(C)) + conv_b.reshape(())
    weight = jax.nn.sigmoid(
        jnp.einsum("nd,bd->bn", query, outs.reshape(B, -1)))              # (B, N)
    w_chan = jnp.tile(weight, (1, C // N))  # channel c -> weight[c % N]
    return inputs * w_chan[:, :, None, None]


if __name__ == "__main__":
    # Small deterministic example consistent with the module defaults:
    # dim=C=6, length=N=3, size=4  =>  query dim D = 16, H=W=16.
    B, C, H, W = 2, 6, 16, 16
    N, SIZE = 3, 4
    D = SIZE * SIZE

    key = jax.random.PRNGKey(0)
    k1, k2, k3, k4 = jax.random.split(key, 4)
    inputs = jax.random.normal(k1, (B, C, H, W), dtype=jnp.float32)
    query = jax.random.normal(k2, (N, D), dtype=jnp.float32)
    # Deterministic init of Conv2d(dim, 1, kernel_size=1) parameters.
    conv_w = jax.random.normal(k3, (1, C, 1, 1), dtype=jnp.float32) * 0.1
    conv_b = jax.random.normal(k4, (1,), dtype=jnp.float32) * 0.1

    out = gql_pallas(inputs, query, conv_w, conv_b, size=SIZE)
    jax.block_until_ready(out)

    ref = gql_reference(inputs, query, conv_w, conv_b, size=SIZE)
    assert out.shape == (B, C, H, W)
    assert out.dtype == inputs.dtype
    assert jnp.allclose(out, ref, atol=1e-5, rtol=1e-5), "mismatch vs reference"

    print("KERNEL_OK")
</pallas_src>

<mosaic_0001>
module attributes {stable_mosaic.version = 11 : i64} {
  func.func @gql_kernel(%arg0: i32, %arg1: memref<24x256xf32, #tpu.memory_space<vmem>>, %arg2: memref<256x3xf32, #tpu.memory_space<vmem>>, %arg3: memref<4x24xf32, #tpu.memory_space<vmem>>, %arg4: memref<1x3xf32, #tpu.memory_space<vmem>>, %arg5: memref<24x4xf32, #tpu.memory_space<vmem>>, %arg6: memref<24x3xf32, #tpu.memory_space<vmem>>, %arg7: memref<24x256xf32, #tpu.memory_space<vmem>>) attributes {dimension_semantics = [#tpu.dimension_semantics<parallel>], iteration_bounds = array<i64: 1>, scalar_prefetch = 0 : i64, scratch_operands = 0 : i64, tpu.core_type = #tpu.core_type<tc>, window_params = [{transform_indices = @transform_0, window_bounds = array<i64: 24, 256>}, {pipeline_mode = #tpu.pipeline_mode<synchronous>, transform_indices = @transform_1, window_bounds = array<i64: 256, 3>}, {pipeline_mode = #tpu.pipeline_mode<synchronous>, transform_indices = @transform_2, window_bounds = array<i64: 4, 24>}, {pipeline_mode = #tpu.pipeline_mode<synchronous>, transform_indices = @transform_3, window_bounds = array<i64: 1, 3>}, {pipeline_mode = #tpu.pipeline_mode<synchronous>, transform_indices = @transform_4, window_bounds = array<i64: 24, 4>}, {pipeline_mode = #tpu.pipeline_mode<synchronous>, transform_indices = @transform_5, window_bounds = array<i64: 24, 3>}, {transform_indices = @transform_6, window_bounds = array<i64: 24, 256>}]} {
    %c0 = arith.constant 0 : index
    %c0_0 = arith.constant 0 : index
    %0 = vector.load %arg1[%c0, %c0_0] : memref<24x256xf32, #tpu.memory_space<vmem>>, vector<24x256xf32>
    %c0_1 = arith.constant 0 : index
    %c0_2 = arith.constant 0 : index
    %1 = vector.load %arg2[%c0_1, %c0_2] : memref<256x3xf32, #tpu.memory_space<vmem>>, vector<256x3xf32>
    %cst = arith.constant dense<0.000000e+00> : vector<24x3xf32>
    %2 = tpu.matmul %0, %1, %cst {dimension_numbers = #tpu.dot_dimension_numbers<[1], [0], [0], [1], [0, 0, 1, 1], [], []>} : vector<24x256xf32>, vector<256x3xf32>, vector<24x3xf32> -> vector<24x3xf32>
    %c0_3 = arith.constant 0 : index
    %c0_4 = arith.constant 0 : index
    %3 = vector.load %arg3[%c0_3, %c0_4] : memref<4x24xf32, #tpu.memory_space<vmem>>, vector<4x24xf32>
    %cst_5 = arith.constant dense<0.000000e+00> : vector<4x3xf32>
    %4 = tpu.matmul %3, %2, %cst_5 {dimension_numbers = #tpu.dot_dimension_numbers<[1], [0], [0], [1], [0, 0, 1, 1], [], []>} : vector<4x24xf32>, vector<24x3xf32>, vector<4x3xf32> -> vector<4x3xf32>
    %c0_6 = arith.constant 0 : index
    %c0_7 = arith.constant 0 : index
    %5 = vector.load %arg4[%c0_6, %c0_7] : memref<1x3xf32, #tpu.memory_space<vmem>>, vector<1x3xf32>
    %6 = vector.broadcast %5 : vector<1x3xf32> to vector<4x3xf32>
    %7 = arith.addf %4, %6 : vector<4x3xf32>
    %8 = arith.negf %7 : vector<4x3xf32>
    %9 = math.exp %8 : vector<4x3xf32>
    %cst_8 = arith.constant 1.000000e+00 : f32
    %10 = vector.broadcast %cst_8 : f32 to vector<4x3xf32>
    %11 = arith.addf %10, %9 : vector<4x3xf32>
    %12 = arith.divf %10, %11 : vector<4x3xf32>
    %c0_9 = arith.constant 0 : index
    %c0_10 = arith.constant 0 : index
    %13 = vector.load %arg5[%c0_9, %c0_10] : memref<24x4xf32, #tpu.memory_space<vmem>>, vector<24x4xf32>
    %cst_11 = arith.constant dense<0.000000e+00> : vector<24x3xf32>
    %14 = tpu.matmul %13, %12, %cst_11 {dimension_numbers = #tpu.dot_dimension_numbers<[1], [0], [0], [1], [0, 0, 1, 1], [], []>} : vector<24x4xf32>, vector<4x3xf32>, vector<24x3xf32> -> vector<24x3xf32>
    %c0_12 = arith.constant 0 : index
    %c0_13 = arith.constant 0 : index
    %15 = vector.load %arg6[%c0_12, %c0_13] : memref<24x3xf32, #tpu.memory_space<vmem>>, vector<24x3xf32>
    %16 = arith.mulf %14, %15 : vector<24x3xf32>
    %cst_14 = arith.constant dense<0.000000e+00> : vector<24xf32>
    %17 = vector.multi_reduction <add>, %16, %cst_14 [1] : vector<24x3xf32> to vector<24xf32>
    %18 = vector.shape_cast %17 : vector<24xf32> to vector<24x1xf32>
    %19 = vector.broadcast %18 : vector<24x1xf32> to vector<24x256xf32>
    %20 = arith.mulf %0, %19 : vector<24x256xf32>
    %c0_15 = arith.constant 0 : index
    %c0_16 = arith.constant 0 : index
    %21 = vector.load %arg7[%c0_15, %c0_16] : memref<24x256xf32, #tpu.memory_space<vmem>>, vector<24x256xf32>
    tpu.vector_store %arg7[%c0_15, %c0_16], %20 {strides = array<i32>} : memref<24x256xf32, #tpu.memory_space<vmem>>, vector<24x256xf32>,
    return
  }
  func.func @transform_0(%arg0: i32) -> (i32, i32) {
    %c0_i32 = arith.constant 0 : i32
    %c0_i32_0 = arith.constant 0 : i32
    return %arg0, %c0_i32 : i32, i32
  }
  func.func @transform_1(%arg0: i32) -> (i32, i32) {
    %c0_i32 = arith.constant 0 : i32
    %c0_i32_0 = arith.constant 0 : i32
    %c0_i32_1 = arith.constant 0 : i32
    return %c0_i32, %c0_i32_0 : i32, i32
  }
  func.func @transform_2(%arg0: i32) -> (i32, i32) {
    %c0_i32 = arith.constant 0 : i32
    %c0_i32_0 = arith.constant 0 : i32
    %c0_i32_1 = arith.constant 0 : i32
    return %c0_i32, %c0_i32_0 : i32, i32
  }
  func.func @transform_3(%arg0: i32) -> (i32, i32) {
    %c0_i32 = arith.constant 0 : i32
    %c0_i32_0 = arith.constant 0 : i32
    %c0_i32_1 = arith.constant 0 : i32
    return %c0_i32, %c0_i32_0 : i32, i32
  }
  func.func @transform_4(%arg0: i32) -> (i32, i32) {
    %c0_i32 = arith.constant 0 : i32
    %c0_i32_0 = arith.constant 0 : i32
    %c0_i32_1 = arith.constant 0 : i32
    return %c0_i32, %c0_i32_0 : i32, i32
  }
  func.func @transform_5(%arg0: i32) -> (i32, i32) {
    %c0_i32 = arith.constant 0 : i32
    %c0_i32_0 = arith.constant 0 : i32
    %c0_i32_1 = arith.constant 0 : i32
    return %c0_i32, %c0_i32_0 : i32, i32
  }
  func.func @transform_6(%arg0: i32) -> (i32, i32) {
    %c0_i32 = arith.constant 0 : i32
    %c0_i32_0 = arith.constant 0 : i32
    return %arg0, %c0_i32 : i32, i32
  }
}

</mosaic_0001>

<bundles_post_ra>
// kernel: tpu_custom_call.1
= control target key start
LH: loop header
LB: loop body
LE: loop exit
PB: predicated region body
PF: predicated region fallthrough
CT: control target
= control target key end

     0   :  { %s735_s0 = inlined_call_operand.vmem [shape: f32[24,256], index: 0, kind: input, shape index: {}]   ;;  %s736_s1 = inlined_call_operand.vmem [shape: f32[256,3], index: 1, kind: input, shape index: {}]   ;;  %s737_s2 = inlined_call_operand.vmem [shape: f32[4,24], index: 2, kind: input, shape index: {}]   ;;  %s738_s3 = inlined_call_operand.vmem [shape: f32[1,3], index: 3, kind: input, shape index: {}]   ;;  %s739_s4 = inlined_call_operand.vmem [shape: f32[24,4], index: 4, kind: input, shape index: {}]   ;;  %s740_s5 = inlined_call_operand.vmem [shape: f32[24,3], index: 5, kind: input, shape index: {}]   ;;  %s741_s6 = inlined_call_operand.hbm [shape: f32[24,256], index: 6, kind: output, shape index: {}]  }
   0x1   :  { %v46_v0 = vld [vmem:[%s736_s1 + $0x80] sm:$0xff]  ;;  %v47_v1 = vld [vmem:[%s736_s1 + $0x88] sm:$0xff]  ;;  %v48_v5 = vld [vmem:[%s736_s1 + $0x90] sm:$0xff] }
   0x2   :  { %v30_v2 = vld [vmem:[%s736_s1] sm:$0xff]  ;;  %v447_v3 = vpack.c.bf16 %v47_v1, %v46_v0  ;;  %v31_v4 = vld [vmem:[%s736_s1 + $0x8] sm:$0xff]  ;;  %v49_v6 = vld [vmem:[%s736_s1 + $0x98] sm:$0xff] }
   0x3   :  { %v449_v7 = vpack.c.bf16 %v31_v4, %v30_v2  ;;  %v451_v8 = vpack.c.bf16 %v49_v6, %v48_v5  ;;  %v32_v9 = vld [vmem:[%s736_s1 + $0x10] sm:$0xff]  ;;  %v33_v10 = vld [vmem:[%s736_s1 + $0x18] sm:$0xff]  ;;  %v50_v11 = vld [vmem:[%s736_s1 + $0xa0] sm:$0xff] }
   0x4   :  { %448 = vmatprep.subr.bf16.mxu0 %v447_v3  ;;  %v51_v12 = vld [vmem:[%s736_s1 + $0xa8] sm:$0xff]  ;;  %v453_v13 = vpack.c.bf16 %v33_v10, %v32_v9  ;;  %v34_v15 = vld [vmem:[%s736_s1 + $0x20] sm:$0xff]  ;;  %v52_v17 = vld [vmem:[%s736_s1 + $0xb0] sm:$0xff] }
   0x5   :  { %450 = vmatpush3.bf16.msra.mxu0 %v449_v7  ;;  %v455_v14 = vpack.c.bf16 %v51_v12, %v50_v11  ;;  %v35_v16 = vld [vmem:[%s736_s1 + $0x28] sm:$0xff]  ;;  %v53_v18 = vld [vmem:[%s736_s1 + $0xb8] sm:$0xff]  ;;  %v36_v21 = vld [vmem:[%s736_s1 + $0x30] sm:$0xff] }
   0x6   :  { %452 = vmatprep.subr.bf16.mxu0 %v451_v8  ;;  %v457_v19 = vpack.c.bf16 %v35_v16, %v34_v15  ;;  %v459_v20 = vpack.c.bf16 %v53_v18, %v52_v17  ;;  %v37_v22 = vld [vmem:[%s736_s1 + $0x38] sm:$0xff]  ;;  %v54_v23 = vld [vmem:[%s736_s1 + $0xc0] sm:$0xff]  ;;  %v55_v24 = vld [vmem:[%s736_s1 + $0xc8] sm:$0xff] }
   0x7   :  { %v614_v25 = vld [vmem:[%s735_s0 + $0x8] sm:$0xff]  ;;  %v461_v26 = vpack.c.bf16 %v37_v22, %v36_v21 }
   0x8   :  { %126 = vmatprep.mubr.f32.mxu0 %v614_v25 }
   0x9   :  { %454 = vmatpush3.bf16.msra.mxu0 %v453_v13 }
   0xa   :  { %456 = vmatprep.subr.bf16.mxu0 %v455_v14 }
   0xd   :  { %458 = vmatpush3.bf16.msra.mxu0 %v457_v19 }
   0xe   :  { %11 = vsyncpa [#allocation3], 0  ;;  %460 = vmatprep.subr.bf16.mxu0 %v459_v20  ;;  %v463_v27 = vpack.c.bf16 %v55_v24, %v54_v23  ;;  %v38_v28 = vld [vmem:[%s736_s1 + $0x40] sm:$0xff]  ;;  %v39_v29 = vld [vmem:[%s736_s1 + $0x48] sm:$0xff]  ;;  %v516_v54 = vmov 0.0|0.0   ;;  %vm517_vm0 = vmmov 0  }
   0xf   :  { %v56_v30 = vld [vmem:[%s736_s1 + $0xd0] sm:$0xff]  ;;  %v57_v31 = vld [vmem:[%s736_s1 + $0xd8] sm:$0xff]  ;;  %v465_v32 = vpack.c.bf16 %v39_v29, %v38_v28  ;;  %v58_v36 = vld [vmem:[%s736_s1 + $0xe0] sm:$0xff]  ;;  %479 = vmatprep.subr.bf16.mxu1 %v516_v54  ;;  %v518_v55 = vmov 0.0   ;;  %vm150_vm1 = vcmask 195584   ;;  %vm243_vm2 = vcmask 1043456  }
  0x10   :  { %v467_v33 = vpack.c.bf16 %v57_v31, %v56_v30  ;;  %v40_v34 = vld [vmem:[%s736_s1 + $0x50] sm:$0xff]  ;;  %v41_v35 = vld [vmem:[%s736_s1 + $0x58] sm:$0xff]  ;;  %v59_v37 = vld [vmem:[%s736_s1 + $0xe8] sm:$0xff]  ;;  %433 = vmatprep.mubr.msk.f32.mxu1 %vm517_vm0, %v518_v55  ;;  %vm233_vm3 = vcmask 31744   ;;  %vm333_vm4 = vcmask 23552  }
  0x11   :  { %462 = vmatpush3.bf16.msra.mxu0 %v461_v26  ;;  %v469_v38 = vpack.c.bf16 %v41_v35, %v40_v34  ;;  %v471_v39 = vpack.c.bf16 %v59_v37, %v58_v36  ;;  %v42_v40 = vld [vmem:[%s736_s1 + $0x60] sm:$0xff]  ;;  %v43_v41 = vld [vmem:[%s736_s1 + $0x68] sm:$0xff]  ;;  %v60_v42 = vld [vmem:[%s736_s1 + $0xf0] sm:$0xff] }
  0x12   :  { %464 = vmatprep.subr.bf16.mxu0 %v463_v27  ;;  %v61_v43 = vld [vmem:[%s736_s1 + $0xf8] sm:$0xff]  ;;  %v473_v44 = vpack.c.bf16 %v43_v41, %v42_v40  ;;  %v44_v46 = vld [vmem:[%s736_s1 + $0x70] sm:$0xff]  ;;  %v662_v49 = vld [vmem:[%s735_s0] sm:$0xff] }
  0x13   :  { %v475_v45 = vpack.c.bf16 %v61_v43, %v60_v42  ;;  %v45_v47 = vld [vmem:[%s736_s1 + $0x78] sm:$0xff]  ;;  %v674_v51 = vld [vmem:[%s735_s0 + $0x10] sm:$0xff]  ;;  %v679_v52 = vld [vmem:[%s735_s0 + $0x28] sm:$0xff] }
  0x14   :  { %v477_v48 = vpack.c.bf16 %v45_v47, %v44_v46  ;;  %v667_v50 = vld [vmem:[%s735_s0 + $0x18] sm:$0xff]  ;;  %v686_v53 = vld [vmem:[%s735_s0 + $0x20] sm:$0xff]  ;;  %v231_v12 = vld [vmem:[%s739_s4 + $0x8] sm:$0xff] }
  0x15   :  { %466 = vmatpush3.bf16.msra.mxu0 %v465_v32  ;;  %v142_v2 = vld [vmem:[%s737_s2] sm:$0xf]  ;;  %v232_v13 = vld [vmem:[%s739_s4 + $0x10] sm:$0xff]  ;;  %v328_v18 = vld [vmem:[%s740_s5 + $0x8] sm:$0xff] }
  0x16   :  { %468 = vmatprep.subr.bf16.mxu0 %v467_v33  ;;  %v371_v3 = vld [vmem:[%s738_s3] ss:$0 sm:$0xff]  ;;  %v329_v23 = vld [vmem:[%s740_s5 + $0x10] sm:$0xff] }
  0x17   :  { %v230_v10 = vld [vmem:[%s739_s4] sm:$0xff] }
  0x18   :  { %v327_v14 = vld [vmem:[%s740_s5] sm:$0xff]  ;;  %s519_s5 = smov [#allocation2]  }
  0x19   :  { %470 = vmatpush3.bf16.msra.mxu0 %v469_v38  ;;  %s360_s12 = sshll.u32 %s519_s5, 4  ;;  %s361_s12 = int_to_ptr.vmem [resolvable:$true] %s360_s12 }
  0x1a   :  { %472 = vmatprep.subr.bf16.mxu0 %v471_v39  ;;  %s492_s13 = scalar_lea.vmem %s361_s12, 768  ;;  %p497_p1 = scmp.lt.s32.totalorder %s361_s12, %s361_s12 }
  0x1b   :  { %p493_p0 = scmp.ne.s32.totalorder %s361_s12, %s492_s13  ;;  %p498_p2 = scmp.lt.s32.totalorder %s492_s13, %s492_s13 }
  0x1d   :  { %474 = vmatpush3.bf16.msra.mxu0 %v473_v44  ;;  %p499_p3 = por %p498_p2, %p497_p1 }
  0x1e   :  { %476 = vmatprep.subr.bf16.mxu0 %v475_v45 }
  0x1f   :  { %p500_p4 = pnand %p499_p3, %p493_p0 }
  0x21   :  { %478 = vmatpush3.bf16.msra.mxu0 %v477_v48 }
  0x24   :  { %127 = vmatmul.mubr.f32.vlgmr.msra.gmra.mrb[0].mxu0 %v662_v49 }
  0x25   :  { %131 = vmatprep.mubr.f32.mxu0 %v667_v50 }
  0x28   :  { %132 = vmatmul.mubr.f32.gmra.mrb[2].mxu0 %v674_v51 }
  0x29   :  { %136 = vmatprep.mubr.f32.mxu0 %v679_v52 }
  0x2c   :  { %137 = vmatmul.mubr.f32.gmra.mrb[4].mxu0 %v686_v53 }
  0xf7   :  { %v410_v56 = vpop.f32.mrb[0].mxu0 }
  0xf8   :  { %v411_v57 = vpop.f32.mrb[1].mxu0 }
  0xf9   :  { %v412_v58 = vadd.f32 %v411_v57, %v410_v56 }
  0xfb   :  { %v413_v59 = vpop.f32.mrb[2].mxu0 }
  0xfc   :  { %v414_v60 = vpop.f32.mrb[3].mxu0 }
  0xfd   :  { %v415_v61 = vadd.f32 %v414_v60, %v413_v59 }
  0xff   :  { %v416_v62 = vpop.f32.mrb[4].mxu0  ;;  %v480_v63 = vpack.c.bf16 %v415_v61, %v412_v58 }
 0x100   :  { %v417_v0 = vpop.f32.mrb[5].mxu0 }
 0x101   :  { %v418_v1 = vadd.f32 %v417_v0, %v416_v62  ;;  %481 = vmatpush3.bf16.msra.mxu1 %v480_v63 }
 0x102   :  { %431 = vmatprep.subr.mxu1 %v518_v55 }
 0x105   :  { %432 = vmatpush3.msra.mxu1 %v418_v1 }
 0x106   :  { %434 = vmatmul.mubr.msk.f32.vlgmr.msra.gmra.mrb[0].mxu1 %vm150_vm1, %v142_v2  ;;  %436 = vmatprep.subr.mxu1 %v518_v55 }
 0x107   :  { %438 = vmatprep.mubr.msk.f32.mxu1 %vm517_vm0, %v518_v55 }
 0x1d9   :  { %v220_v4 = vpop.f32.mrb[0].mxu1 }
 0x1da   :  { %v221_v5 = vadd.f32 %v371_v3, %v220_v4  ;;  %v435_v6 = vpop.f32.mrb[1].mxu1 }
 0x1dc   :  { %v373_v7 = vmul.f32 -1.442695, %v221_v5 }
 0x1de   :  { %488 = vpow2.f32 %v373_v7 }
 0x1e8   :  { %v489_v8 = vpop.eup %488 }
 0x1e9   :  { %v227_v9 = vadd.f32 1.0, %v489_v8 }
 0x1eb   :  { %490 = vrcp.f32 %v227_v9 }
 0x1f5   :  { %v491_v11 = vpop.eup %490 }
 0x1f6   :  { %437 = vmatpush3.msk.msra.mxu1 %vm243_vm2, %v491_v11 }
 0x1f7   :  { %439 = vmatmul.mubr.msk.f32.vlgmr.msra.gmra.mrb[2].mxu1 %vm233_vm3, %v230_v10 }
 0x1f8   :  { %441 = vmatprep.mubr.msk.f32.mxu1 %vm517_vm0, %v518_v55 }
 0x1fb   :  { %442 = vmatmul.mubr.msk.f32.gmra.mrb[4].mxu1 %vm233_vm3, %v231_v12 }
 0x1fc   :  { %444 = vmatprep.mubr.msk.f32.mxu1 %vm517_vm0, %v518_v55 }
 0x1ff   :  { %445 = vmatmul.mubr.msk.f32.gmra.mrb[6].mxu1 %vm233_vm3, %v232_v13 }
 0x2ca   :  { %v313_v15 = vpop.f32.mrb[2].mxu1 }
 0x2cb   :  { %v330_v16 = vmul.f32 %v327_v14, %v313_v15  ;;  %v440_v17 = vpop.f32.mrb[3].mxu1 }
 0x2cd   :  { %v334_v19 = vsel %vm333_vm4, %v330_v16, 0.0 }
 0x2ce   :  { %v318_v20 = vpop.f32.mrb[4].mxu1  ;;  %335 = vadd.xlane.f32.xlu0 %v334_v19 }
 0x2cf   :  { %v331_v21 = vmul.f32 %v328_v18, %v318_v20  ;;  %v443_v22 = vpop.f32.mrb[5].mxu1 }
 0x2d1   :  { %v337_v24 = vsel %vm333_vm4, %v331_v21, 0.0 }
 0x2d2   :  { %v323_v26 = vpop.f32.mrb[6].mxu1  ;;  %338 = vadd.xlane.f32.xlu0 %v337_v24 }
 0x2d3   :  { %v332_v27 = vmul.f32 %v329_v23, %v323_v26  ;;  %v446_v28 = vpop.f32.mrb[7].mxu1 }
 0x2d5   :  { %v340_v29 = vsel %vm333_vm4, %v332_v27, 0.0 }
 0x2d6   :  { %341 = vadd.xlane.f32.xlu1 %v340_v29 }
 0x35b   :  { %v336_v30 = vpop.xlane.xlu0 %335 }
 0x35c   :  { %v343_v31 = vmul.f32 %v336_v30, %v662_v49  ;;  %v344_v32 = vmul.f32 %v336_v30, %v614_v25 }
 0x35e   :  { %349 = vst [vmem:[#allocation2] sm:$0xff] %v343_v31  ;;  %350 = vst [vmem:[#allocation2 + $0x8] sm:$0xff] %v344_v32 }
 0x35f   :  { %v339_v33 = vpop.xlane.xlu0 %338 }
 0x360   :  { %v345_v34 = vmul.f32 %v339_v33, %v674_v51  ;;  %v346_v35 = vmul.f32 %v339_v33, %v667_v50 }
 0x362   :  { %351 = vst [vmem:[#allocation2 + $0x10] sm:$0xff] %v345_v34  ;;  %352 = vst [vmem:[#allocation2 + $0x18] sm:$0xff] %v346_v35 }
 0x363   :  { %v342_v36 = vpop.xlane.xlu1 %341 }
 0x364   :  { %v347_v37 = vmul.f32 %v342_v36, %v686_v53  ;;  %v348_v38 = vmul.f32 %v342_v36, %v679_v52 }
 0x366   :  { %353 = vst [vmem:[#allocation2 + $0x20] sm:$0xff] %v347_v37  ;;  %354 = vst [vmem:[#allocation2 + $0x28] sm:$0xff] %v348_v38 }
 0x367   :  { %503 = shalt.err (!%p500_p4)
}
 0x368   :  { %s504_s16 = scalar_lea.hbm %s741_s6, 768 }
 0x369   :  { %p505_p5 = scmp.ne.s32.totalorder %s741_s6, %s504_s16  ;;  %p508_p6 = scmp.lt.u32.totalorder %s504_s16, %s741_s6 }
 0x36b   :  { %p510_p7 = pnand %p508_p6, %p505_p5 }
 0x36d   :  { %513 = shalt.err (!%p510_p7)
}
 0x36e   :  { %s520_s20 = smov 256   ;;  %s521_s21 = smov 16  }
 0x36f   :  { %366 = dma.vmem_to_hbm [thread:$0]  %s361_s12, 768, %s741_s6, [#allocation3], %s520_s20, %s520_s20, %s521_s21  }
 0x370   :  { %514 = dma.done.wait [#allocation3], 768  }
 0x371   :  { %515 = vsyncadd [#allocation3], 4294966528 }
 0x372   :  { %370 = vsyncpa [#allocation3], 1 }

</bundles_post_ra>
